<compile_context>
chip_gen: v5e
topology: v5e:2x2
jax: 0.10.0
libtpu: 0.0.40
codegen_flags: <defaults>
</compile_context>

<pallas_src>
import functools

import jax
import jax.numpy as jnp
from jax.experimental import pallas as pl
from jax.experimental.pallas import tpu as pltpu


# --------------------------------------------------------------------------------------
# Shared helpers (traced inside kernels)
# --------------------------------------------------------------------------------------

def _hsigmoid(a):
    return jnp.clip(a + 3.0, 0.0, 6.0) * (1.0 / 6.0)


def _attention_column(pooled_col_f32, w1, b1, w2, b2):
    """pooled: (C,1) f32; w1: (Ci,C); b1: (Ci,1); w2: (C,Ci); b2: (C,1) -> (C,1) f32."""
    h = jnp.dot(w1, pooled_col_f32, preferred_element_type=jnp.float32) + b1
    h = jnp.maximum(h, 0.0)
    a = jnp.dot(w2, h, preferred_element_type=jnp.float32) + b2
    return _hsigmoid(a)


# --------------------------------------------------------------------------------------
# Kernels
# --------------------------------------------------------------------------------------

def _fused_kernel(x_ref, w1_ref, b1_ref, w2_ref, b2_ref, o_ref, *, inv_hw):
    """One image per grid step: x block (1, C, HW) resident in VMEM."""
    x = x_ref[0]                                                       # (C, HW), x dtype
    pooled = jnp.sum(x.astype(jnp.float32), axis=1, keepdims=True) * inv_hw   # (C, 1) f32
    attn = _attention_column(pooled, w1_ref[...], b1_ref[...], w2_ref[...], b2_ref[...])
    o_ref[0] = x * attn.astype(x.dtype)


def _pool_kernel(x_ref, pooled_ref, acc_ref, *, inv_hw, hw, tile, needs_mask):
    """Tiled global mean.  x block (1, C, T); pooled block (1, C, 1); acc scratch (C, T) f32."""
    t = pl.program_id(1)

    @pl.when(t == 0)
    def _():
        acc_ref[...] = jnp.zeros_like(acc_ref)

    x = x_ref[0].astype(jnp.float32)                                   # (C, T)
    if needs_mask:
        lane = jax.lax.broadcasted_iota(jnp.int32, x.shape, 1)
        x = jnp.where(t * tile + lane < hw, x, 0.0)
    acc_ref[...] += x                                                   # element-wise (VPU)

    @pl.when(t == pl.num_programs(1) - 1)
    def _():
        # single cross-lane reduce + scale + (C,1) store per image
        pooled_ref[0] = jnp.sum(acc_ref[...], axis=1, keepdims=True) * inv_hw


def _scale_kernel(pooled_ref, w1_ref, b1_ref, w2_ref, b2_ref, x_ref, o_ref, attn_ref):
    """Tiled scale with the FC folded in.  attn computed once per image (t == 0)."""
    t = pl.program_id(1)

    @pl.when(t == 0)
    def _():
        attn = _attention_column(pooled_ref[0], w1_ref[...], b1_ref[...],
                                 w2_ref[...], b2_ref[...])
        attn_ref[...] = attn.astype(attn_ref.dtype)

    # multiply in x.dtype (no slab upcast); (C, T) * (C, 1) broadcast along lanes
    o_ref[0] = x_ref[0] * attn_ref[...]


# --------------------------------------------------------------------------------------
# Wrapper
# --------------------------------------------------------------------------------------

def _vmem_capacity_bytes():
    try:
        return int(pltpu.get_tpu_info().vmem_capacity_bytes)
    except Exception:
        return 128 * 1024 * 1024   # v5e/v6e default


def _pick_hw_tile(hw, c, x_itemsize, budget_bytes):
    """Largest multiple-of-128 lane tile whose live VMEM footprint fits the budget.
    Worst-pass live bytes per lane: pass 2 in+out double-buffered (4*C*itemsize) vs
    pass 1 in double-buffered + f32 accumulator (2*C*itemsize + 4*C)."""
    per_lane = c * max(4 * x_itemsize, 2 * x_itemsize + 4)
    max_t = max(128, (budget_bytes // max(per_lane, 1)) // 128 * 128)
    hw_pad = ((hw + 127) // 128) * 128
    return min(max_t, hw_pad)


def se_module_pallas(x_nchw, w1, b1, w2, b2, *, force_tiled=False, tile_budget_bytes=None):
    """x_nchw: (N, C, H, W).
    w1: conv1 weight (Ci, C, 1, 1); b1: (Ci,)
    w2: conv2 weight (C, Ci, 1, 1); b2: (C,)
    Returns (N, C, H, W)."""
    N, C, H, W = x_nchw.shape
    Ci = w1.shape[0]
    HW = H * W
    dtype = x_nchw.dtype
    itemsize = jnp.dtype(dtype).itemsize

    # NCHW -> (N, C, HW): pure reshape of a contiguous array (zero-cost).
    x = x_nchw.reshape(N, C, HW)

    # 1x1 convs as tiny matvecs on the pooled column (f32 for accuracy; negligible bytes).
    w1_mat = w1.reshape(Ci, C).astype(jnp.float32)     # (Ci, C)
    b1_col = b1.reshape(Ci, 1).astype(jnp.float32)
    w2_mat = w2.reshape(C, Ci).astype(jnp.float32)     # (C, Ci)
    b2_col = b2.reshape(C, 1).astype(jnp.float32)
    weight_bytes = 4 * (2 * Ci * C + Ci + C)

    capacity = _vmem_capacity_bytes()
    vmem_limit = min(capacity // 2, 64 * 1024 * 1024)          # 32 MiB v7x / 64 MiB v5e,v6e
    fused_budget = capacity * 3 // 8                           # ~24 MiB v7x / 48 MiB v5e,v6e
    fused_live = 4 * C * HW * itemsize + weight_bytes          # in+out, double-buffered

    weight_args = (w1_mat, b1_col, w2_mat, b2_col)

    # ------------------------------------------------------------------------------
    # Fused single-pass path: one HBM read + one HBM write of x, one launch.
    # ------------------------------------------------------------------------------
    if not force_tiled and fused_live <= fused_budget:
        w_specs = [
            pl.BlockSpec((Ci, C), lambda n: (0, 0)),
            pl.BlockSpec((Ci, 1), lambda n: (0, 0)),
            pl.BlockSpec((C, Ci), lambda n: (0, 0)),
            pl.BlockSpec((C, 1), lambda n: (0, 0)),
        ]
        out = pl.pallas_call(
            functools.partial(_fused_kernel, inv_hw=1.0 / HW),
            out_shape=jax.ShapeDtypeStruct((N, C, HW), dtype),
            grid_spec=pltpu.PrefetchScalarGridSpec(
                num_scalar_prefetch=0,
                grid=(N,),
                in_specs=[pl.BlockSpec((1, C, HW), lambda n: (n, 0, 0))] + w_specs,
                out_specs=pl.BlockSpec((1, C, HW), lambda n: (n, 0, 0)),
            ),
            compiler_params=pltpu.CompilerParams(
                dimension_semantics=("parallel",),
                vmem_limit_bytes=vmem_limit),
        )(x, *weight_args)
        return out.reshape(N, C, H, W)

    # ------------------------------------------------------------------------------
    # Tiled two-pass path (large slabs): pool, then scale with the FC folded in.
    # ------------------------------------------------------------------------------
    if tile_budget_bytes is None:
        tile_budget_bytes = capacity // 8                      # ~8 MiB v7x / 16 MiB v5e,v6e
    T = _pick_hw_tile(HW, C, itemsize, tile_budget_bytes)
    n_t = -(-HW // T)                                          # cdiv: ragged HW handled by mask
    needs_mask = (HW % T) != 0

    # ---- pass 1: global average pool -> (N, C, 1) f32 ----
    pooled = pl.pallas_call(
        functools.partial(_pool_kernel, inv_hw=1.0 / HW, hw=HW, tile=T,
                          needs_mask=needs_mask),
        out_shape=jax.ShapeDtypeStruct((N, C, 1), jnp.float32),
        grid_spec=pltpu.PrefetchScalarGridSpec(
            num_scalar_prefetch=0,
            grid=(N, n_t),
            in_specs=[pl.BlockSpec((1, C, T), lambda n, t: (n, 0, t))],
            out_specs=pl.BlockSpec((1, C, 1), lambda n, t: (n, 0, 0)),
            scratch_shapes=[pltpu.VMEM((C, T), jnp.float32)]),
        compiler_params=pltpu.CompilerParams(
            dimension_semantics=("parallel", "arbitrary"),
            vmem_limit_bytes=vmem_limit),
    )(x)

    # ---- pass 2: FC + hsigmoid (once per image, t == 0) + per-channel scale ----
    out = pl.pallas_call(
        _scale_kernel,
        out_shape=jax.ShapeDtypeStruct((N, C, HW), dtype),
        grid_spec=pltpu.PrefetchScalarGridSpec(
            num_scalar_prefetch=0,
            grid=(N, n_t),
            in_specs=[
                pl.BlockSpec((1, C, 1), lambda n, t: (n, 0, 0)),
                pl.BlockSpec((Ci, C), lambda n, t: (0, 0)),
                pl.BlockSpec((Ci, 1), lambda n, t: (0, 0)),
                pl.BlockSpec((C, Ci), lambda n, t: (0, 0)),
                pl.BlockSpec((C, 1), lambda n, t: (0, 0)),
                pl.BlockSpec((1, C, T), lambda n, t: (n, 0, t)),
            ],
            out_specs=pl.BlockSpec((1, C, T), lambda n, t: (n, 0, t)),
            scratch_shapes=[pltpu.VMEM((C, 1), dtype)]),
        compiler_params=pltpu.CompilerParams(
            # t axis "arbitrary": attn scratch is written at t == 0 and reused by later tiles.
            dimension_semantics=("parallel", "arbitrary"),
            vmem_limit_bytes=vmem_limit),
    )(pooled, *weight_args, x)

    return out.reshape(N, C, H, W)


# --------------------------------------------------------------------------------------
# Pure-JAX reference (mirrors the PyTorch module)
# --------------------------------------------------------------------------------------

def se_module_ref(x_nchw, w1, b1, w2, b2):
    N, C, H, W = x_nchw.shape
    Ci = w1.shape[0]
    pooled = jnp.mean(x_nchw, axis=(2, 3))                    # (N, C)
    h = pooled @ w1.reshape(Ci, C).T + b1                     # (N, Ci)
    h = jnp.maximum(h, 0.0)
    a = h @ w2.reshape(C, Ci).T + b2                          # (N, C)
    a = jnp.clip(a + 3.0, 0.0, 6.0) / 6.0
    return x_nchw * a[:, :, None, None]


if __name__ == "__main__":
    key = jax.random.PRNGKey(0)
    reduction = 4

    # ---- primary check: fused single-pass path ----
    N, C, H, W = 2, 8, 16, 16
    Ci = C // reduction
    kx, k1, k2, k3, k4, kx2 = jax.random.split(key, 6)
    x = jax.random.normal(kx, (N, C, H, W), dtype=jnp.float32)
    w1 = jax.random.normal(k1, (Ci, C, 1, 1), dtype=jnp.float32) * 0.2
    b1 = jax.random.normal(k2, (Ci,), dtype=jnp.float32) * 0.1
    w2 = jax.random.normal(k3, (C, Ci, 1, 1), dtype=jnp.float32) * 0.2
    b2 = jax.random.normal(k4, (C,), dtype=jnp.float32) * 0.1

    out = jax.block_until_ready(se_module_pallas(x, w1, b1, w2, b2))
    ref = se_module_ref(x, w1, b1, w2, b2)
    assert out.shape == (N, C, H, W)
    assert jnp.allclose(out, ref, atol=1e-5, rtol=1e-5), "fused path mismatch vs reference"

    # ---- secondary check: tiled path with ragged HW (masked tail tile), forced small tile ----
    H2, W2 = 9, 31                                            # HW = 279, not a multiple of 128
    x2 = jax.random.normal(kx2, (N, C, H2, W2), dtype=jnp.float32)
    out2 = jax.block_until_ready(
        se_module_pallas(x2, w1, b1, w2, b2, force_tiled=True, tile_budget_bytes=20000))
    ref2 = se_module_ref(x2, w1, b1, w2, b2)
    assert out2.shape == (N, C, H2, W2)
    assert jnp.allclose(out2, ref2, atol=1e-5, rtol=1e-5), "tiled path mismatch vs reference"

    print("KERNEL_OK")
</pallas_src>

<mosaic_0001>
module attributes {stable_mosaic.version = 11 : i64} {
  func.func @_fused_kernel(%arg0: i32, %arg1: memref<1x8x256xf32, #tpu.memory_space<vmem>>, %arg2: memref<2x8xf32, #tpu.memory_space<vmem>>, %arg3: memref<2x1xf32, #tpu.memory_space<vmem>>, %arg4: memref<8x2xf32, #tpu.memory_space<vmem>>, %arg5: memref<8x1xf32, #tpu.memory_space<vmem>>, %arg6: memref<1x8x256xf32, #tpu.memory_space<vmem>>) attributes {dimension_semantics = [#tpu.dimension_semantics<parallel>], iteration_bounds = array<i64: 2>, scalar_prefetch = 0 : i64, scratch_operands = 0 : i64, tpu.core_type = #tpu.core_type<tc>, window_params = [{transform_indices = @transform_0, window_bounds = array<i64: 1, 8, 256>}, {pipeline_mode = #tpu.pipeline_mode<synchronous>, transform_indices = @transform_1, window_bounds = array<i64: 2, 8>}, {pipeline_mode = #tpu.pipeline_mode<synchronous>, transform_indices = @transform_2, window_bounds = array<i64: 2, 1>}, {pipeline_mode = #tpu.pipeline_mode<synchronous>, transform_indices = @transform_3, window_bounds = array<i64: 8, 2>}, {pipeline_mode = #tpu.pipeline_mode<synchronous>, transform_indices = @transform_4, window_bounds = array<i64: 8, 1>}, {transform_indices = @transform_5, window_bounds = array<i64: 1, 8, 256>}]} {
    %c0 = arith.constant 0 : index
    %c0_0 = arith.constant 0 : index
    %c0_1 = arith.constant 0 : index
    %0 = vector.load %arg1[%c0, %c0_0, %c0_1] : memref<1x8x256xf32, #tpu.memory_space<vmem>>, vector<1x8x256xf32>
    %1 = vector.shape_cast %0 : vector<1x8x256xf32> to vector<8x256xf32>
    %cst = arith.constant dense<0.000000e+00> : vector<8xf32>
    %2 = vector.multi_reduction <add>, %1, %cst [1] : vector<8x256xf32> to vector<8xf32>
    %3 = vector.shape_cast %2 : vector<8xf32> to vector<8x1xf32>
    %cst_2 = arith.constant 3.906250e-03 : f32
    %4 = vector.broadcast %cst_2 : f32 to vector<8x1xf32>
    %5 = arith.mulf %3, %4 : vector<8x1xf32>
    %c0_3 = arith.constant 0 : index
    %c0_4 = arith.constant 0 : index
    %6 = vector.load %arg2[%c0_3, %c0_4] : memref<2x8xf32, #tpu.memory_space<vmem>>, vector<2x8xf32>
    %c0_5 = arith.constant 0 : index
    %c0_6 = arith.constant 0 : index
    %7 = vector.load %arg3[%c0_5, %c0_6] : memref<2x1xf32, #tpu.memory_space<vmem>>, vector<2x1xf32>
    %c0_7 = arith.constant 0 : index
    %c0_8 = arith.constant 0 : index
    %8 = vector.load %arg4[%c0_7, %c0_8] : memref<8x2xf32, #tpu.memory_space<vmem>>, vector<8x2xf32>
    %c0_9 = arith.constant 0 : index
    %c0_10 = arith.constant 0 : index
    %9 = vector.load %arg5[%c0_9, %c0_10] : memref<8x1xf32, #tpu.memory_space<vmem>>, vector<8x1xf32>
    %cst_11 = arith.constant dense<0.000000e+00> : vector<2x1xf32>
    %10 = tpu.matmul %6, %5, %cst_11 {dimension_numbers = #tpu.dot_dimension_numbers<[1], [0], [0], [1], [0, 0, 1, 1], [], []>} : vector<2x8xf32>, vector<8x1xf32>, vector<2x1xf32> -> vector<2x1xf32>
    %11 = arith.addf %10, %7 : vector<2x1xf32>
    %cst_12 = arith.constant 0.000000e+00 : f32
    %12 = vector.broadcast %cst_12 : f32 to vector<2x1xf32>
    %13 = arith.maximumf %11, %12 : vector<2x1xf32>
    %cst_13 = arith.constant dense<0.000000e+00> : vector<8x1xf32>
    %14 = tpu.matmul %8, %13, %cst_13 {dimension_numbers = #tpu.dot_dimension_numbers<[1], [0], [0], [1], [0, 0, 1, 1], [], []>} : vector<8x2xf32>, vector<2x1xf32>, vector<8x1xf32> -> vector<8x1xf32>
    %15 = arith.addf %14, %9 : vector<8x1xf32>
    %cst_14 = arith.constant 3.000000e+00 : f32
    %16 = vector.broadcast %cst_14 : f32 to vector<8x1xf32>
    %17 = arith.addf %15, %16 : vector<8x1xf32>
    %cst_15 = arith.constant 0.000000e+00 : f32
    %cst_16 = arith.constant 6.000000e+00 : f32
    %18 = vector.broadcast %cst_15 : f32 to vector<8x1xf32>
    %19 = arith.maximumf %18, %17 : vector<8x1xf32>
    %20 = vector.broadcast %cst_16 : f32 to vector<8x1xf32>
    %21 = arith.minimumf %20, %19 : vector<8x1xf32>
    %cst_17 = arith.constant 0.166666672 : f32
    %22 = vector.broadcast %cst_17 : f32 to vector<8x1xf32>
    %23 = arith.mulf %21, %22 : vector<8x1xf32>
    %24 = vector.broadcast %23 : vector<8x1xf32> to vector<8x256xf32>
    %25 = arith.mulf %1, %24 : vector<8x256xf32>
    %c0_18 = arith.constant 0 : index
    %c0_19 = arith.constant 0 : index
    %c0_20 = arith.constant 0 : index
    %26 = vector.load %arg6[%c0_18, %c0_19, %c0_20] : memref<1x8x256xf32, #tpu.memory_space<vmem>>, vector<1x8x256xf32>
    %27 = vector.shape_cast %26 : vector<1x8x256xf32> to vector<8x256xf32>
    %28 = vector.shape_cast %25 : vector<8x256xf32> to vector<1x8x256xf32>
    tpu.vector_store %arg6[%c0_18, %c0_19, %c0_20], %28 {strides = array<i32>} : memref<1x8x256xf32, #tpu.memory_space<vmem>>, vector<1x8x256xf32>,
    return
  }
  func.func @transform_0(%arg0: i32) -> (i32, i32, i32) {
    %c0_i32 = arith.constant 0 : i32
    %c0_i32_0 = arith.constant 0 : i32
    %c0_i32_1 = arith.constant 0 : i32
    return %arg0, %c0_i32, %c0_i32_0 : i32, i32, i32
  }
  func.func @transform_1(%arg0: i32) -> (i32, i32) {
    %c0_i32 = arith.constant 0 : i32
    %c0_i32_0 = arith.constant 0 : i32
    %c0_i32_1 = arith.constant 0 : i32
    return %c0_i32, %c0_i32_0 : i32, i32
  }
  func.func @transform_2(%arg0: i32) -> (i32, i32) {
    %c0_i32 = arith.constant 0 : i32
    %c0_i32_0 = arith.constant 0 : i32
    %c0_i32_1 = arith.constant 0 : i32
    return %c0_i32, %c0_i32_0 : i32, i32
  }
  func.func @transform_3(%arg0: i32) -> (i32, i32) {
    %c0_i32 = arith.constant 0 : i32
    %c0_i32_0 = arith.constant 0 : i32
    %c0_i32_1 = arith.constant 0 : i32
    return %c0_i32, %c0_i32_0 : i32, i32
  }
  func.func @transform_4(%arg0: i32) -> (i32, i32) {
    %c0_i32 = arith.constant 0 : i32
    %c0_i32_0 = arith.constant 0 : i32
    %c0_i32_1 = arith.constant 0 : i32
    return %c0_i32, %c0_i32_0 : i32, i32
  }
  func.func @transform_5(%arg0: i32) -> (i32, i32, i32) {
    %c0_i32 = arith.constant 0 : i32
    %c0_i32_0 = arith.constant 0 : i32
    %c0_i32_1 = arith.constant 0 : i32
    return %arg0, %c0_i32, %c0_i32_0 : i32, i32, i32
  }
}

</mosaic_0001>

<bundles_post_ra>
// kernel: tpu_custom_call.1
= control target key start
LH: loop header
LB: loop body
LE: loop exit
PB: predicated region body
PF: predicated region fallthrough
CT: control target
= control target key end

     0   :  { %10 = vsyncpa [#allocation3], 0  ;;  %s745_s0 = inlined_call_operand.hbm [shape: f32[2,8,256], index: 0, kind: input, shape index: {}]   ;;  %s746_s1 = inlined_call_operand.vmem [shape: f32[2,8], index: 1, kind: input, shape index: {}]   ;;  %s747_s2 = inlined_call_operand.vmem [shape: f32[2,1], index: 2, kind: input, shape index: {}]   ;;  %s748_s3 = inlined_call_operand.vmem [shape: f32[8,2], index: 3, kind: input, shape index: {}]   ;;  %s749_s4 = inlined_call_operand.vmem [shape: f32[8,1], index: 4, kind: input, shape index: {}]   ;;  %s750_s5 = inlined_call_operand.hbm [shape: f32[2,8,256], index: 5, kind: output, shape index: {}]  }
   0x1   :  { %12 = vsyncpa [#allocation3 + $0x1], 0 }
   0x2   :  { %13 = vsyncpa [#allocation4], 0 }
   0x3   :  { %15 = vsyncpa [#allocation4 + $0x1], 0  ;;  %s602_s18 = smov 0   ;;  %s604_s19 = smov 0  }
   0x4   :  { %s606_s20 = smov 0   ;;  %s608_s21 = smov 0  }
   0x5 LB: > { %s623_s22 = sadd.s32 4294967295, %s569_s21   ;;  %s406_s23 = sadd.s32 4294967294, %s569_s21   ;;  %s569_s21 = sphi %s608_s21, %s760_s21   ;;  %s565_s20 = sphi %s606_s20, %s759_s20   ;;  %s561_s19 = sphi %s604_s19, %s758_s19   ;;  %s557_s18 = sphi %s602_s18, %s757_s18  }
   0x6   : > { %s627_s24 = sadd.s32 1, %s569_s21   ;;  %s28_s25 = sadd.s32 1, %s565_s20 }
   0x7   : > { %s25_s26 = ssub.s32 %s569_s21, %s627_s24  ;;  %p35_p0 = scmp.ne.s32.totalorder %s565_s20, %s561_s19 }
   0x8   : > { %p26_p1 = scmp.eq.s32.totalorder %s25_s26, 0  ;;  %p36_p2 = scmp.eq.s32.totalorder %s569_s21, 0 }
   0x9   : > { %p41_p3 = scmp.ne.s32.totalorder %s561_s19, %s557_s18  ;;  %p42_p4 = scmp.eq.s32.totalorder %s623_s22, 0 }
   0xa   : > { %s639_s27 = scalar_select %p26_p1, %s565_s20, %s28_s25  }
   0xb   : > { %p641_p5 = por %p36_p2, %p35_p0  ;;  %p645_p6 = por %p42_p4, %p41_p3 }
   0xc   : > { %p149_p7 = scmp.eq.s32.totalorder %s623_s22, 1  ;;  %p155_p8 = scmp.eq.s32.totalorder %s406_s23, 1 }
   0xd   : > { %p437_p10 = scmp.lt.s32.totalorder %s569_s21, 2  ;;  %s187_s7 = sand.u32 1, %s565_s20  }
   0xe   : > { %p652_p11 = por %p149_p7, %p35_p0  ;;  %p656_p12 = por %p155_p8, %p41_p3 }
   0xf   : > { %s423_s8 = sshll.u32 %s569_s21, 4  ;;  %s409_s9 = sshll.u32 %s187_s7, 4 }
  0x10   : > { %s196_s12 = scalar_lea.hbm %s745_s0, %s423_s8  ;;  %s191_s14 = scalar_lea.vmem [#allocation2], %s409_s9 }
  0x11   : > { %s198_s13 = sshll.u32 %s196_s12, 4  ;;  %s200_s15 = sshll.u32 %s191_s14, 4  ;;  %s199_s13 = int_to_ptr.hbm [resolvable:$true] %s198_s13  ;;  %s201_s15 = int_to_ptr.vmem [resolvable:$true] %s200_s15 }
  0x12   : > { %p667_p13 = pnand %p437_p10, %p641_p5  ;;  %p412_p0 = scmp.ge.s32.totalorder %s569_s21, 1 }
  0x13   : > { %p205_p1 = scmp.lt.s32.totalorder %s569_s21, 3  ;;  %s188_s17 = scalar_lea.sflag [#allocation3], %s187_s7 }
  0x14   : > { %s473_s23 = sshra.s32 %s199_s13, 4  ;;  %p477_p3 = pneg %p667_p13  ;;  %s474_s23 = int_to_ptr.hbm [resolvable:$true] %s473_s23 }
  0x15   : > { %s475_s25 = scalar_lea.hbm %s474_s23, 16  ;;  %s480_s28 = scalar_lea.hbm %s745_s0, 32 }
  0x16   : > { %p476_p2 = scmp.ne.s32.totalorder %s474_s23, %s475_s25  ;;  %p481_p5 = scmp.lt.s32.totalorder %s474_s23, %s745_s0 }
  0x17   : > { %p482_p8 = scmp.lt.s32.totalorder %s480_s28, %s475_s25 }
  0x18   : > { %p478_p4 = pnand %p477_p3, %p476_p2 }
  0x19   : > { %p483_p10 = por %p482_p8, %p481_p5 }
  0x1a   : > { %p479_p7 = pneg %p478_p4 }
  0x1c   : > { %p484_p9 = pnand %p483_p10, %p479_p7 }
  0x1e   : > { %487 = shalt.err (!%p484_p9)
}
  0x1f   : > { %432 = dma.hbm_to_vmem [thread:$0]  (!%p667_p13), %s199_s13, 256, %s201_s15, %s188_s17  }
  0x20   : > { %p206_p2 = pnand %p412_p0, %p205_p1 }
  0x21   : > { %s688_s7 = sand.u32 (!%p206_p2), 1, %s561_s19  }
  0x22   : > { %209 = sbr.rel (%p206_p2) target bundleno = 550 (0x226), region = 40  ;;  %s413_s11 = sshll.u32 (!%p206_p2), %s688_s7, 4 }
  0x23   : > { %s212_s12 = scalar_lea.sflag (!%p206_p2), [#allocation3], %s688_s7  ;;  %s215_s14 = scalar_lea.vmem (!%p206_p2), [#allocation2], %s413_s11 }
  0x27   : > { %548 = dma.done.wait (%p645_p6), %s212_s12, 256  }
  0x28   : > { %550 = vsyncadd (%p645_p6), %s212_s12, 4294967040  ;;  %v243_v0 = vld [vmem:[%s215_s14] sm:$0xff]  ;;  %v244_v1 = vld [vmem:[%s215_s14 + $0x8] sm:$0xff]  ;;  %vm253_vm0 = vcmask 64512   ;;  %vm282_vm1 = vcmask 1041408   ;;  %vm278_vm2 = vcmask 15360  }
  0x29   : > { %v245_v2 = vadd.f32 %v244_v1, %v243_v0  ;;  %v249_v5 = vld [vmem:[%s746_s1] sm:$0x3]  ;;  %v571_v11 = vmov 0   ;;  %s424_s8 = sshll.u32 %s623_s22, 4  ;;  %s242_s12 = scalar_lea.vmem [#allocation5], %s413_s11 }
  0x2a   : > { %v250_v6 = vld [vmem:[%s747_s2] sm:$0x3]  ;;  %472 = vset.pattern.permute.xlu0 %v571_v11  ;;  %s331_s10 = scalar_lea.hbm %s750_s5, %s424_s8  ;;  %s333_s14 = sshll.u32 %s242_s12, 4  ;;  %s334_s14 = int_to_ptr.vmem [resolvable:$true] %s333_s14 }
  0x2b   : > { %246 = vadd.xlane.f32.xlu0 %v245_v2  ;;  %v251_v10 = vld [vmem:[%s748_s3] sm:$0xff]  ;;  %s335_s13 = sshll.u32 %s331_s10, 4  ;;  %s320_s15 = scalar_lea.sflag [#allocation4], %s688_s7  ;;  %s336_s13 = int_to_ptr.hbm [resolvable:$true] %s335_s13 }
  0x2c   : > { %v252_v12 = vld [vmem:[%s749_s4] sm:$0xff]  ;;  %s517_s16 = sshra.s32 %s336_s13, 4  ;;  %s523_s11 = scalar_lea.hbm %s750_s5, 32  ;;  %s518_s16 = int_to_ptr.hbm [resolvable:$true] %s517_s16 }
  0x2d   : > { %s519_s22 = scalar_lea.hbm %s518_s16, 16  ;;  %p524_p0 = scmp.lt.s32.totalorder %s518_s16, %s750_s5 }
  0x2e   : > { %p520_p6 = scmp.ne.s32.totalorder %s518_s16, %s519_s22  ;;  %p525_p1 = scmp.lt.s32.totalorder %s523_s11, %s519_s22 }
  0x30   : > { %p521_p9 = pnand %p520_p6, %p652_p11  ;;  %p526_p3 = por %p525_p1, %p524_p0 }
  0x32   : > { %p522_p13 = pneg %p521_p9 }
  0x34   : > { %p527_p4 = pnand %p526_p3, %p522_p13 }
  0x9e   : > { %v247_v3 = vpop.xlane.xlu0 %246 }
  0x9f   : > { %v248_v4 = vmul.f32 0.00390625, %v247_v3 }
  0xa1   : > { %272 = vmatpush.msra.mxu0 %v248_v4 }
  0xa2   : > { %415 = vmatmul.msk.f32.vlgmr.msra.gmra.mxu0 %vm253_vm0, %v249_v5 }
 0x11f   : > { %v274_v7 = vpop.f32.mrf.mxu0 }
 0x120   : > { %v275_v8 = vadd.f32 %v274_v7, %v250_v6 }
 0x122   : > { %v277_v9 = vmax.f32 %v275_v8, 0.0 }
 0x124   : > { %416 = vmatpush.msk.msra.mxu1 %vm282_vm1, %v277_v9 }
 0x125   : > { %417 = vmatmul.msk.f32.vlgmr.msra.gmra.mxu1 %vm278_vm2, %v251_v10 }
 0x1a2   : > { %v303_v13 = vpop.f32.mrf.mxu1 }
 0x1a3   : > { %v304_v14 = vadd.f32 %v303_v13, %v252_v12 }
 0x1a5   : > { %v306_v15 = vadd.f32 3.0, %v304_v14 }
 0x1a7   : > { %v307_v16 = vmax.f32 %v306_v15, 0.0 }
 0x1a9   : > { %v308_v17 = vmin.f32 %v307_v16, 6.0 }
 0x1ab   : > { %v309_v18 = vmul.f32 0.16666667, %v308_v17 }
 0x1ad   : > { %312 = vperm.xlu0 %472, %v309_v18  }
 0x21f   : > { %v313_v19 = vpop.permute.xlu0 %312 }
 0x220   : > { %v315_v20 = vmul.f32 %v313_v19, %v243_v0  ;;  %v316_v21 = vmul.f32 %v313_v19, %v244_v1 }
 0x222   : > { %317 = vst [vmem:[%s242_s12] sm:$0xff] %v315_v20 }
 0x223   : > { %318 = vst [vmem:[%s242_s12 + $0x8] sm:$0xff] %v316_v21 }
 0x224   : > { %530 = shalt.err (!%p527_p4)
}
 0x225   : > { %427 = dma.vmem_to_hbm [thread:$0]  (%p652_p11), %s334_s14, 256, %s336_s13, %s320_s15  }
 0x226 PF: > { %s347_s7 = sand.u32 1, %s557_s18   ;;  %p756_p7 = scmp.ge.s32.totalorder %s569_s21, 2 }
 0x227   : > { %s348_s26 = scalar_lea.sflag [#allocation4], %s347_s7 }
 0x228   : > { %p434_p5 = pnand %p756_p7, %p656_p12 }
 0x22a   : > { %p435_p8 = pneg %p434_p5 }
 0x22c   : > { %552 = dma.done.wait (%p435_p8), %s348_s26, 256  }
 0x22d   : > { %554 = vsyncadd (%p435_p8), %s348_s26, 4294967040  ;;  %p18_p10 = scmp.ge.s32.totalorder %s627_s24, 4   ;;  %s757_s18 = smov %s561_s19 }
 0x22e   : > { %s758_s19 = smov %s565_s20  ;;  %s759_s20 = smov %s639_s27 }
 0x22f   : > { %s760_s21 = smov %s627_s24  ;;  %20 = sbr.rel (!%p18_p10) target bundleno = 5 (0x5), region = 85 }
 0x234   :  { %354 = vsyncpa [#allocation3], 1 }
 0x235   :  { %356 = vsyncpa [#allocation3 + $0x1], 1 }
 0x236   :  { %357 = vsyncpa [#allocation4], 1 }
 0x237   :  { %359 = vsyncpa [#allocation4 + $0x1], 1 }

</bundles_post_ra>
